<compile_context>
chip_gen: v5e
topology: v5e:2x2
jax: 0.10.0
libtpu: 0.0.40
codegen_flags: <defaults>
</compile_context>

<pallas_src>
import jax
import jax.numpy as jnp
from jax.experimental import pallas as pl
from jax.experimental.pallas import tpu as pltpu


# ---------------------------- VMEM sizing helpers ----------------------------

def _vmem_budget_and_limit():
    """Generation-aware (budget_for_tiles, scoped_vmem_limit) in bytes."""
    try:
        cap = int(pltpu.get_tpu_info().vmem_capacity_bytes)
    except Exception:  # conservative fallback (v7x per-TC VMEM)
        cap = 64 * 1024 * 1024
    budget = (cap * 3) // 8      # 24 MiB on 64 MiB VMEM, 48 MiB on 128 MiB VMEM
    limit = (cap * 3) // 4       # 48 MiB / 96 MiB scoped vmem limit
    return budget, limit


def _choose_tile_h(H, W, total_channels, budget_bytes):
    """Largest multiple-of-8 row tile whose double-buffered f32 blocks fit the
    budget.  No divisibility requirement on H (partial last block is masked);
    falls back to full H (always a legal block shape) for tiny images."""
    per_row = total_channels * W * 4 * 2          # f32, x2 double-buffering
    max_th = min(H, max(budget_bytes // max(per_row, 1), 1))
    if max_th >= H:
        return H
    th = (max_th // 8) * 8
    return th if th >= 8 else H


# ------------------------------ Pallas kernels -------------------------------

def _dual_composite_kernel(human_ref, face_ref, mask_ref, scene_ref,
                           human_r_ref, face_r_ref, mask_r_ref, scene_r_ref,
                           face_out_ref, comp_out_ref,
                           face_out_r_ref, comp_out_r_ref):
    """One pass over a (TH, W) row-tile producing all four eval composites
    (plain + refined) in a single kernel invocation."""

    def _one(h_ref, f_ref, m_ref, s_ref, fo_ref, co_ref):
        human = h_ref[...]                       # (1, 3, TH, W)
        face = f_ref[...]                        # (1, 4, TH, W)
        frgb = face[:, :3]
        fa = face[:, 3:4]
        # is_face = (frgb != -1).float() * alpha == where(frgb != -1, alpha, 0)
        is_face = jnp.where(frgb != -1.0, fa, 0.0)
        # human*(1-is_face) + frgb*is_face  ==  human + is_face*(frgb - human)
        fo_ref[...] = human + is_face * (frgb - human)
        # is_fg = mask > 0.9 ; out = is_fg*human + (1-is_fg)*scene (binary sel)
        co_ref[...] = jnp.where(m_ref[...] > 0.9, human, s_ref[...])

    _one(human_ref, face_ref, mask_ref, scene_ref, face_out_ref, comp_out_ref)
    _one(human_r_ref, face_r_ref, mask_r_ref, scene_r_ref,
         face_out_r_ref, comp_out_r_ref)


def _cam_transform_kernel(mesh_ref, rinv_ref, t_ref, out_ref):
    """torch: matmul(inv(R), (mesh - t).T).T, done lane/sublane-dense.

    mesh_ref/out_ref: (B, 3, S, 128) VMEM (S = padded_N/128);
    rinv_ref: (B*9,) SMEM; t_ref: (B*3,) SMEM.
    Pure VPU scalar-splat FMAs (no MXU for a degenerate 3x3 contraction)."""
    B = out_ref.shape[0]
    for b in range(B):                           # static, B is tiny
        c0 = mesh_ref[b, 0] - t_ref[3 * b + 0]   # (S, 128) full vregs
        c1 = mesh_ref[b, 1] - t_ref[3 * b + 1]
        c2 = mesh_ref[b, 2] - t_ref[3 * b + 2]
        for i in range(3):
            out_ref[b, i] = (rinv_ref[9 * b + 3 * i + 0] * c0 +
                             rinv_ref[9 * b + 3 * i + 1] * c1 +
                             rinv_ref[9 * b + 3 * i + 2] * c2)


def _weighted_sq_reg_kernel(a_ref, b_ref, w_ref, out_ref):
    # loss['gaussian_mean_reg'] = (mean_offset**2 + mean_offset_offset**2) * weight
    # a/b/out: (B, Lp) lane-dense (Lp multiple of 128); w: (1, Lp) broadcast.
    out_ref[...] = (a_ref[...] ** 2 + b_ref[...] ** 2) * w_ref[...]


# --------------------------------- wrappers ----------------------------------

def dual_composite(human_img, face_render, human_mask, scene_human_img,
                   human_img_r, face_render_r, human_mask_r, scene_human_img_r):
    """All arrays (B,*,H,W) f32.  Returns (face_img, composed,
    face_img_refined, composed_refined), each (B,3,H,W) f32."""
    B, _, H, W = human_img.shape
    total_channels = 2 * (3 + 4 + 1 + 3) + 4 * 3   # 22 in + 12 out channels
    budget, vmem_limit = _vmem_budget_and_limit()
    th = _choose_tile_h(H, W, total_channels, budget)
    imap = lambda b, h: (b, 0, h, 0)

    bytes_accessed = total_channels * B * H * W * 4
    flops = 30 * B * H * W   # rough elementwise estimate (cmp/sel/fma per pixel)

    return pl.pallas_call(
        _dual_composite_kernel,
        out_shape=(jax.ShapeDtypeStruct((B, 3, H, W), jnp.float32),
                   jax.ShapeDtypeStruct((B, 3, H, W), jnp.float32),
                   jax.ShapeDtypeStruct((B, 3, H, W), jnp.float32),
                   jax.ShapeDtypeStruct((B, 3, H, W), jnp.float32)),
        grid=(B, pl.cdiv(H, th)),
        in_specs=[
            pl.BlockSpec((1, 3, th, W), imap),
            pl.BlockSpec((1, 4, th, W), imap),
            pl.BlockSpec((1, 1, th, W), imap),
            pl.BlockSpec((1, 3, th, W), imap),
            pl.BlockSpec((1, 3, th, W), imap),
            pl.BlockSpec((1, 4, th, W), imap),
            pl.BlockSpec((1, 1, th, W), imap),
            pl.BlockSpec((1, 3, th, W), imap),
        ],
        out_specs=(pl.BlockSpec((1, 3, th, W), imap),
                   pl.BlockSpec((1, 3, th, W), imap),
                   pl.BlockSpec((1, 3, th, W), imap),
                   pl.BlockSpec((1, 3, th, W), imap)),
        compiler_params=pltpu.CompilerParams(
            dimension_semantics=("parallel", "parallel"),
            vmem_limit_bytes=vmem_limit),
        cost_estimate=pl.CostEstimate(flops=flops, transcendentals=0,
                                      bytes_accessed=bytes_accessed),
    )(human_img, face_render, human_mask, scene_human_img,
      human_img_r, face_render_r, human_mask_r, scene_human_img_r)


def cam_transform(mesh, R, t):
    """mesh (B,N,3), R (B,3,3), t (B,3) -> camera-frame mesh (B,N,3)."""
    B, N, _ = mesh.shape
    rinv = jnp.linalg.inv(R).astype(jnp.float32)   # glue: tiny 3x3 inverse in JAX
    Np = ((N + 1023) // 1024) * 1024               # full 8x128 vregs per plane
    mesh_t = jnp.transpose(mesh.astype(jnp.float32), (0, 2, 1))   # (B,3,N)
    mesh_t = jnp.pad(mesh_t, ((0, 0), (0, 0), (0, Np - N)))
    mesh_t = mesh_t.reshape(B, 3, Np // 128, 128)
    out = pl.pallas_call(
        _cam_transform_kernel,
        out_shape=jax.ShapeDtypeStruct((B, 3, Np // 128, 128), jnp.float32),
        in_specs=[
            pl.BlockSpec(memory_space=pltpu.MemorySpace.VMEM),
            pl.BlockSpec(memory_space=pltpu.MemorySpace.SMEM),
            pl.BlockSpec(memory_space=pltpu.MemorySpace.SMEM),
        ],
        out_specs=pl.BlockSpec(memory_space=pltpu.MemorySpace.VMEM),
    )(mesh_t,
      rinv.reshape(B * 9),
      t.astype(jnp.float32).reshape(B * 3))
    out = out.reshape(B, 3, Np)[:, :, :N]
    return jnp.transpose(out, (0, 2, 1))


def weighted_sq_reg(a, b, weight):
    """a,b (B,V,3); weight (1,V,1) -> (B,V,3)  ==  (a**2 + b**2) * weight."""
    B, V, C = a.shape
    L = V * C
    Lp = ((L + 127) // 128) * 128                  # lane-dense, unmasked stores
    pad = ((0, 0), (0, Lp - L))
    a2 = jnp.pad(a.astype(jnp.float32).reshape(B, L), pad)
    b2 = jnp.pad(b.astype(jnp.float32).reshape(B, L), pad)
    w2 = jnp.pad(jnp.broadcast_to(weight.astype(jnp.float32),
                                  (1, V, C)).reshape(1, L), pad)
    out2 = pl.pallas_call(
        _weighted_sq_reg_kernel,
        out_shape=jax.ShapeDtypeStruct((B, Lp), jnp.float32),
        in_specs=[pl.BlockSpec(memory_space=pltpu.MemorySpace.VMEM)] * 3,
        out_specs=pl.BlockSpec(memory_space=pltpu.MemorySpace.VMEM),
    )(a2, b2, w2)
    return out2[:, :L].reshape(B, V, C)


# -------------------------------- Model port ----------------------------------

class ModelPallas:
    """Eval-path port of avatar Model.forward built on the Pallas kernels above."""

    def __init__(self, key, num_verts=64):
        # TODO(synk): smplx_layer / human_gaussian / scene_gaussian parameters not
        # reproducible without the SMPL-X assets; deterministic canonical mesh instead.
        self.canonical_mesh = jax.random.normal(key, (num_verts, 3), jnp.float32)

    def get_smplx_outputs(self, cam_param, batch_size):
        mesh = jnp.broadcast_to(self.canonical_mesh[None],
                                (batch_size,) + self.canonical_mesh.shape)
        return cam_transform(mesh, cam_param['R'], cam_param['t'])

    def forward(self, data, cur_itr=0, mode='test'):
        assert mode == 'test'  # TODO(synk): train losses (SSIM/LPIPS/Laplacian) not ported
        B = data['cam_param']['R'].shape[0]

        # TODO(synk): GaussianRenderer / MeshRenderer rasterization not ported;
        # surrogate renders are supplied in `data` by the caller.
        human_img = data['human_img']
        human_mask = data['human_mask']
        human_img_refined = data['human_img_refined']
        human_mask_refined = data['human_mask_refined']
        scene_human_img = data['scene_human_img']
        scene_human_img_refined = data['scene_human_img_refined']
        face_renders = data['face_render']                    # (B, 4, H, W)
        face_renders_refined = data['face_render_refined']

        out = {}
        out['scene_img'] = data['scene_img']
        out['human_img'] = human_img
        out['scene_human_img'] = scene_human_img
        out['human_img_refined'] = human_img_refined
        out['scene_human_img_refined'] = scene_human_img_refined
        out['smplx_mesh'] = self.get_smplx_outputs(data['cam_param'], B)

        face_img, composed, face_img_r, composed_r = dual_composite(
            human_img, face_renders, human_mask, scene_human_img,
            human_img_refined, face_renders_refined, human_mask_refined,
            scene_human_img_refined)

        out['human_face_img'] = face_img
        out['human_face_img_refined'] = face_img_r
        out['scene_human_img_composed'] = composed
        out['scene_human_img_refined_composed'] = composed_r
        return out

    def gaussian_mean_reg(self, mean_offset, mean_offset_offset, weight):
        return weighted_sq_reg(mean_offset, mean_offset_offset, weight)


# -------------------------------- references ----------------------------------

def _ref_face_composite(human, face):
    frgb, fa = face[:, :3], face[:, 3:]
    is_face = (frgb != -1.0).astype(jnp.float32) * fa
    return human * (1 - is_face) + frgb * is_face


def _ref_fg_composite(mask, human, scene):
    is_fg = (mask > 0.9).astype(jnp.float32)
    return is_fg * human + (1 - is_fg) * scene


def _ref_cam_transform(mesh, R, t):
    rinv = jnp.linalg.inv(R)
    centered = mesh - t[:, None, :]
    return jnp.einsum('bij,bnj->bni', rinv, centered)


# ----------------------------------- main --------------------------------------

if __name__ == "__main__":
    key = jax.random.PRNGKey(0)
    ks = jax.random.split(key, 16)
    B, H, W, V = 2, 16, 16, 64

    model = ModelPallas(ks[0], num_verts=V)

    def img(k):
        return jax.random.uniform(k, (B, 3, H, W), jnp.float32)

    face_rgb = jnp.where(jax.random.uniform(ks[6], (B, 3, H, W)) > 0.5,
                         jax.random.uniform(ks[7], (B, 3, H, W)), -1.0)
    face_a = (jax.random.uniform(ks[8], (B, 1, H, W)) > 0.5).astype(jnp.float32)
    face_render = jnp.concatenate([face_rgb, face_a], axis=1)
    face_rgb_r = jnp.where(jax.random.uniform(ks[9], (B, 3, H, W)) > 0.5,
                           jax.random.uniform(ks[10], (B, 3, H, W)), -1.0)
    face_a_r = (jax.random.uniform(ks[11], (B, 1, H, W)) > 0.5).astype(jnp.float32)
    face_render_refined = jnp.concatenate([face_rgb_r, face_a_r], axis=1)

    R = jnp.eye(3)[None] + 0.05 * jax.random.normal(ks[12], (B, 3, 3), jnp.float32)
    t = jax.random.normal(ks[13], (B, 3), jnp.float32)

    data = {
        'img': img(ks[1]),
        'cam_param': {'R': R, 't': t},
        'scene_img': img(ks[1]),
        'human_img': img(ks[2]),
        'human_mask': jax.random.uniform(ks[3], (B, 1, H, W), jnp.float32),
        'human_img_refined': img(ks[4]),
        'human_mask_refined': jax.random.uniform(ks[5], (B, 1, H, W), jnp.float32),
        'scene_human_img': img(ks[14]),
        'scene_human_img_refined': img(ks[15]),
        'face_render': face_render,
        'face_render_refined': face_render_refined,
    }

    out = model.forward(data, cur_itr=0, mode='test')
    out = jax.block_until_ready(out)

    # train-mode elementwise reg term
    mean_off = jax.random.normal(ks[2], (B, V, 3), jnp.float32) * 0.01
    mean_off_off = jax.random.normal(ks[3], (B, V, 3), jnp.float32) * 0.01
    weight = jnp.full((1, V, 1), 10.0, jnp.float32)
    reg = jax.block_until_ready(model.gaussian_mean_reg(mean_off, mean_off_off, weight))

    # correctness checks against pure-JAX references
    import numpy as np
    np.testing.assert_allclose(
        np.asarray(out['human_face_img']),
        np.asarray(_ref_face_composite(data['human_img'], face_render)),
        rtol=1e-5, atol=1e-5)
    np.testing.assert_allclose(
        np.asarray(out['human_face_img_refined']),
        np.asarray(_ref_face_composite(data['human_img_refined'], face_render_refined)),
        rtol=1e-5, atol=1e-5)
    np.testing.assert_allclose(
        np.asarray(out['scene_human_img_composed']),
        np.asarray(_ref_fg_composite(data['human_mask'], data['human_img'],
                                     data['scene_human_img'])),
        rtol=1e-5, atol=1e-5)
    np.testing.assert_allclose(
        np.asarray(out['scene_human_img_refined_composed']),
        np.asarray(_ref_fg_composite(data['human_mask_refined'],
                                     data['human_img_refined'],
                                     data['scene_human_img_refined'])),
        rtol=1e-5, atol=1e-5)
    canonical = jnp.broadcast_to(model.canonical_mesh[None], (B, V, 3))
    np.testing.assert_allclose(
        np.asarray(out['smplx_mesh']),
        np.asarray(_ref_cam_transform(canonical, R, t)),
        rtol=1e-4, atol=1e-4)
    np.testing.assert_allclose(
        np.asarray(reg),
        np.asarray((mean_off ** 2 + mean_off_off ** 2) * weight),
        rtol=1e-5, atol=1e-6)

    print("KERNEL_OK")
</pallas_src>

<mosaic_0001>
module attributes {stable_mosaic.version = 11 : i64} {
  func.func @_cam_transform_kernel(%arg0: memref<2x3x8x128xf32, #tpu.memory_space<vmem>>, %arg1: memref<18xf32, #tpu.memory_space<smem>>, %arg2: memref<6xf32, #tpu.memory_space<smem>>, %arg3: memref<2x3x8x128xf32, #tpu.memory_space<vmem>>) attributes {dimension_semantics = [], scalar_prefetch = 0 : i64, scratch_operands = 0 : i64, tpu.core_type = #tpu.core_type<tc>} {
    %c0 = arith.constant 0 : index
    %c0_0 = arith.constant 0 : index
    %c0_1 = arith.constant 0 : index
    %c0_2 = arith.constant 0 : index
    %0 = vector.load %arg0[%c0, %c0_0, %c0_1, %c0_2] : memref<2x3x8x128xf32, #tpu.memory_space<vmem>>, vector<1x1x8x128xf32>
    %1 = vector.shape_cast %0 : vector<1x1x8x128xf32> to vector<8x128xf32>
    %c0_3 = arith.constant 0 : index
    %2 = memref.load %arg2[%c0_3] : memref<6xf32, #tpu.memory_space<smem>>
    %3 = vector.broadcast %2 : f32 to vector<8x128xf32>
    %4 = arith.subf %1, %3 : vector<8x128xf32>
    %c0_4 = arith.constant 0 : index
    %c1 = arith.constant 1 : index
    %c0_5 = arith.constant 0 : index
    %c0_6 = arith.constant 0 : index
    %5 = vector.load %arg0[%c0_4, %c1, %c0_5, %c0_6] : memref<2x3x8x128xf32, #tpu.memory_space<vmem>>, vector<1x1x8x128xf32>
    %6 = vector.shape_cast %5 : vector<1x1x8x128xf32> to vector<8x128xf32>
    %c1_7 = arith.constant 1 : index
    %7 = memref.load %arg2[%c1_7] : memref<6xf32, #tpu.memory_space<smem>>
    %8 = vector.broadcast %7 : f32 to vector<8x128xf32>
    %9 = arith.subf %6, %8 : vector<8x128xf32>
    %c0_8 = arith.constant 0 : index
    %c2 = arith.constant 2 : index
    %c0_9 = arith.constant 0 : index
    %c0_10 = arith.constant 0 : index
    %10 = vector.load %arg0[%c0_8, %c2, %c0_9, %c0_10] : memref<2x3x8x128xf32, #tpu.memory_space<vmem>>, vector<1x1x8x128xf32>
    %11 = vector.shape_cast %10 : vector<1x1x8x128xf32> to vector<8x128xf32>
    %c2_11 = arith.constant 2 : index
    %12 = memref.load %arg2[%c2_11] : memref<6xf32, #tpu.memory_space<smem>>
    %13 = vector.broadcast %12 : f32 to vector<8x128xf32>
    %14 = arith.subf %11, %13 : vector<8x128xf32>
    %c0_12 = arith.constant 0 : index
    %15 = memref.load %arg1[%c0_12] : memref<18xf32, #tpu.memory_space<smem>>
    %16 = vector.broadcast %15 : f32 to vector<8x128xf32>
    %17 = arith.mulf %16, %4 : vector<8x128xf32>
    %c1_13 = arith.constant 1 : index
    %18 = memref.load %arg1[%c1_13] : memref<18xf32, #tpu.memory_space<smem>>
    %19 = vector.broadcast %18 : f32 to vector<8x128xf32>
    %20 = arith.mulf %19, %9 : vector<8x128xf32>
    %21 = arith.addf %17, %20 : vector<8x128xf32>
    %c2_14 = arith.constant 2 : index
    %22 = memref.load %arg1[%c2_14] : memref<18xf32, #tpu.memory_space<smem>>
    %23 = vector.broadcast %22 : f32 to vector<8x128xf32>
    %24 = arith.mulf %23, %14 : vector<8x128xf32>
    %25 = arith.addf %21, %24 : vector<8x128xf32>
    %c0_15 = arith.constant 0 : index
    %c0_16 = arith.constant 0 : index
    %c0_17 = arith.constant 0 : index
    %c0_18 = arith.constant 0 : index
    %26 = vector.load %arg3[%c0_15, %c0_16, %c0_17, %c0_18] : memref<2x3x8x128xf32, #tpu.memory_space<vmem>>, vector<1x1x8x128xf32>
    %27 = vector.shape_cast %26 : vector<1x1x8x128xf32> to vector<8x128xf32>
    %28 = vector.shape_cast %25 : vector<8x128xf32> to vector<1x1x8x128xf32>
    tpu.vector_store %arg3[%c0_15, %c0_16, %c0_17, %c0_18], %28 {strides = array<i32>} : memref<2x3x8x128xf32, #tpu.memory_space<vmem>>, vector<1x1x8x128xf32>,
    %c3 = arith.constant 3 : index
    %29 = memref.load %arg1[%c3] : memref<18xf32, #tpu.memory_space<smem>>
    %30 = vector.broadcast %29 : f32 to vector<8x128xf32>
    %31 = arith.mulf %30, %4 : vector<8x128xf32>
    %c4 = arith.constant 4 : index
    %32 = memref.load %arg1[%c4] : memref<18xf32, #tpu.memory_space<smem>>
    %33 = vector.broadcast %32 : f32 to vector<8x128xf32>
    %34 = arith.mulf %33, %9 : vector<8x128xf32>
    %35 = arith.addf %31, %34 : vector<8x128xf32>
    %c5 = arith.constant 5 : index
    %36 = memref.load %arg1[%c5] : memref<18xf32, #tpu.memory_space<smem>>
    %37 = vector.broadcast %36 : f32 to vector<8x128xf32>
    %38 = arith.mulf %37, %14 : vector<8x128xf32>
    %39 = arith.addf %35, %38 : vector<8x128xf32>
    %c0_19 = arith.constant 0 : index
    %c1_20 = arith.constant 1 : index
    %c0_21 = arith.constant 0 : index
    %c0_22 = arith.constant 0 : index
    %40 = vector.load %arg3[%c0_19, %c1_20, %c0_21, %c0_22] : memref<2x3x8x128xf32, #tpu.memory_space<vmem>>, vector<1x1x8x128xf32>
    %41 = vector.shape_cast %40 : vector<1x1x8x128xf32> to vector<8x128xf32>
    %42 = vector.shape_cast %39 : vector<8x128xf32> to vector<1x1x8x128xf32>
    tpu.vector_store %arg3[%c0_19, %c1_20, %c0_21, %c0_22], %42 {strides = array<i32>} : memref<2x3x8x128xf32, #tpu.memory_space<vmem>>, vector<1x1x8x128xf32>,
    %c6 = arith.constant 6 : index
    %43 = memref.load %arg1[%c6] : memref<18xf32, #tpu.memory_space<smem>>
    %44 = vector.broadcast %43 : f32 to vector<8x128xf32>
    %45 = arith.mulf %44, %4 : vector<8x128xf32>
    %c7 = arith.constant 7 : index
    %46 = memref.load %arg1[%c7] : memref<18xf32, #tpu.memory_space<smem>>
    %47 = vector.broadcast %46 : f32 to vector<8x128xf32>
    %48 = arith.mulf %47, %9 : vector<8x128xf32>
    %49 = arith.addf %45, %48 : vector<8x128xf32>
    %c8 = arith.constant 8 : index
    %50 = memref.load %arg1[%c8] : memref<18xf32, #tpu.memory_space<smem>>
    %51 = vector.broadcast %50 : f32 to vector<8x128xf32>
    %52 = arith.mulf %51, %14 : vector<8x128xf32>
    %53 = arith.addf %49, %52 : vector<8x128xf32>
    %c0_23 = arith.constant 0 : index
    %c2_24 = arith.constant 2 : index
    %c0_25 = arith.constant 0 : index
    %c0_26 = arith.constant 0 : index
    %54 = vector.load %arg3[%c0_23, %c2_24, %c0_25, %c0_26] : memref<2x3x8x128xf32, #tpu.memory_space<vmem>>, vector<1x1x8x128xf32>
    %55 = vector.shape_cast %54 : vector<1x1x8x128xf32> to vector<8x128xf32>
    %56 = vector.shape_cast %53 : vector<8x128xf32> to vector<1x1x8x128xf32>
    tpu.vector_store %arg3[%c0_23, %c2_24, %c0_25, %c0_26], %56 {strides = array<i32>} : memref<2x3x8x128xf32, #tpu.memory_space<vmem>>, vector<1x1x8x128xf32>,
    %c1_27 = arith.constant 1 : index
    %c0_28 = arith.constant 0 : index
    %c0_29 = arith.constant 0 : index
    %c0_30 = arith.constant 0 : index
    %57 = vector.load %arg0[%c1_27, %c0_28, %c0_29, %c0_30] : memref<2x3x8x128xf32, #tpu.memory_space<vmem>>, vector<1x1x8x128xf32>
    %58 = vector.shape_cast %57 : vector<1x1x8x128xf32> to vector<8x128xf32>
    %c3_31 = arith.constant 3 : index
    %59 = memref.load %arg2[%c3_31] : memref<6xf32, #tpu.memory_space<smem>>
    %60 = vector.broadcast %59 : f32 to vector<8x128xf32>
    %61 = arith.subf %58, %60 : vector<8x128xf32>
    %c1_32 = arith.constant 1 : index
    %c1_33 = arith.constant 1 : index
    %c0_34 = arith.constant 0 : index
    %c0_35 = arith.constant 0 : index
    %62 = vector.load %arg0[%c1_32, %c1_33, %c0_34, %c0_35] : memref<2x3x8x128xf32, #tpu.memory_space<vmem>>, vector<1x1x8x128xf32>
    %63 = vector.shape_cast %62 : vector<1x1x8x128xf32> to vector<8x128xf32>
    %c4_36 = arith.constant 4 : index
    %64 = memref.load %arg2[%c4_36] : memref<6xf32, #tpu.memory_space<smem>>
    %65 = vector.broadcast %64 : f32 to vector<8x128xf32>
    %66 = arith.subf %63, %65 : vector<8x128xf32>
    %c1_37 = arith.constant 1 : index
    %c2_38 = arith.constant 2 : index
    %c0_39 = arith.constant 0 : index
    %c0_40 = arith.constant 0 : index
    %67 = vector.load %arg0[%c1_37, %c2_38, %c0_39, %c0_40] : memref<2x3x8x128xf32, #tpu.memory_space<vmem>>, vector<1x1x8x128xf32>
    %68 = vector.shape_cast %67 : vector<1x1x8x128xf32> to vector<8x128xf32>
    %c5_41 = arith.constant 5 : index
    %69 = memref.load %arg2[%c5_41] : memref<6xf32, #tpu.memory_space<smem>>
    %70 = vector.broadcast %69 : f32 to vector<8x128xf32>
    %71 = arith.subf %68, %70 : vector<8x128xf32>
    %c9 = arith.constant 9 : index
    %72 = memref.load %arg1[%c9] : memref<18xf32, #tpu.memory_space<smem>>
    %73 = vector.broadcast %72 : f32 to vector<8x128xf32>
    %74 = arith.mulf %73, %61 : vector<8x128xf32>
    %c10 = arith.constant 10 : index
    %75 = memref.load %arg1[%c10] : memref<18xf32, #tpu.memory_space<smem>>
    %76 = vector.broadcast %75 : f32 to vector<8x128xf32>
    %77 = arith.mulf %76, %66 : vector<8x128xf32>
    %78 = arith.addf %74, %77 : vector<8x128xf32>
    %c11 = arith.constant 11 : index
    %79 = memref.load %arg1[%c11] : memref<18xf32, #tpu.memory_space<smem>>
    %80 = vector.broadcast %79 : f32 to vector<8x128xf32>
    %81 = arith.mulf %80, %71 : vector<8x128xf32>
    %82 = arith.addf %78, %81 : vector<8x128xf32>
    %c1_42 = arith.constant 1 : index
    %c0_43 = arith.constant 0 : index
    %c0_44 = arith.constant 0 : index
    %c0_45 = arith.constant 0 : index
    %83 = vector.load %arg3[%c1_42, %c0_43, %c0_44, %c0_45] : memref<2x3x8x128xf32, #tpu.memory_space<vmem>>, vector<1x1x8x128xf32>
    %84 = vector.shape_cast %83 : vector<1x1x8x128xf32> to vector<8x128xf32>
    %85 = vector.shape_cast %82 : vector<8x128xf32> to vector<1x1x8x128xf32>
    tpu.vector_store %arg3[%c1_42, %c0_43, %c0_44, %c0_45], %85 {strides = array<i32>} : memref<2x3x8x128xf32, #tpu.memory_space<vmem>>, vector<1x1x8x128xf32>,
    %c12 = arith.constant 12 : index
    %86 = memref.load %arg1[%c12] : memref<18xf32, #tpu.memory_space<smem>>
    %87 = vector.broadcast %86 : f32 to vector<8x128xf32>
    %88 = arith.mulf %87, %61 : vector<8x128xf32>
    %c13 = arith.constant 13 : index
    %89 = memref.load %arg1[%c13] : memref<18xf32, #tpu.memory_space<smem>>
    %90 = vector.broadcast %89 : f32 to vector<8x128xf32>
    %91 = arith.mulf %90, %66 : vector<8x128xf32>
    %92 = arith.addf %88, %91 : vector<8x128xf32>
    %c14 = arith.constant 14 : index
    %93 = memref.load %arg1[%c14] : memref<18xf32, #tpu.memory_space<smem>>
    %94 = vector.broadcast %93 : f32 to vector<8x128xf32>
    %95 = arith.mulf %94, %71 : vector<8x128xf32>
    %96 = arith.addf %92, %95 : vector<8x128xf32>
    %c1_46 = arith.constant 1 : index
    %c1_47 = arith.constant 1 : index
    %c0_48 = arith.constant 0 : index
    %c0_49 = arith.constant 0 : index
    %97 = vector.load %arg3[%c1_46, %c1_47, %c0_48, %c0_49] : memref<2x3x8x128xf32, #tpu.memory_space<vmem>>, vector<1x1x8x128xf32>
    %98 = vector.shape_cast %97 : vector<1x1x8x128xf32> to vector<8x128xf32>
    %99 = vector.shape_cast %96 : vector<8x128xf32> to vector<1x1x8x128xf32>
    tpu.vector_store %arg3[%c1_46, %c1_47, %c0_48, %c0_49], %99 {strides = array<i32>} : memref<2x3x8x128xf32, #tpu.memory_space<vmem>>, vector<1x1x8x128xf32>,
    %c15 = arith.constant 15 : index
    %100 = memref.load %arg1[%c15] : memref<18xf32, #tpu.memory_space<smem>>
    %101 = vector.broadcast %100 : f32 to vector<8x128xf32>
    %102 = arith.mulf %101, %61 : vector<8x128xf32>
    %c16 = arith.constant 16 : index
    %103 = memref.load %arg1[%c16] : memref<18xf32, #tpu.memory_space<smem>>
    %104 = vector.broadcast %103 : f32 to vector<8x128xf32>
    %105 = arith.mulf %104, %66 : vector<8x128xf32>
    %106 = arith.addf %102, %105 : vector<8x128xf32>
    %c17 = arith.constant 17 : index
    %107 = memref.load %arg1[%c17] : memref<18xf32, #tpu.memory_space<smem>>
    %108 = vector.broadcast %107 : f32 to vector<8x128xf32>
    %109 = arith.mulf %108, %71 : vector<8x128xf32>
    %110 = arith.addf %106, %109 : vector<8x128xf32>
    %c1_50 = arith.constant 1 : index
    %c2_51 = arith.constant 2 : index
    %c0_52 = arith.constant 0 : index
    %c0_53 = arith.constant 0 : index
    %111 = vector.load %arg3[%c1_50, %c2_51, %c0_52, %c0_53] : memref<2x3x8x128xf32, #tpu.memory_space<vmem>>, vector<1x1x8x128xf32>
    %112 = vector.shape_cast %111 : vector<1x1x8x128xf32> to vector<8x128xf32>
    %113 = vector.shape_cast %110 : vector<8x128xf32> to vector<1x1x8x128xf32>
    tpu.vector_store %arg3[%c1_50, %c2_51, %c0_52, %c0_53], %113 {strides = array<i32>} : memref<2x3x8x128xf32, #tpu.memory_space<vmem>>, vector<1x1x8x128xf32>,
    return
  }
}

</mosaic_0001>

<bundles_post_ra>
// kernel: tpu_custom_call.1
= control target key start
LH: loop header
LB: loop body
LE: loop exit
PB: predicated region body
PF: predicated region fallthrough
CT: control target
= control target key end

     0   :  { %8 = vsyncpa [#allocation3], 0  ;;  %s335_s0 = inlined_call_operand.hbm [shape: f32[2,3,8,128], index: 0, kind: input, shape index: {}]   ;;  %s336_s1 = inlined_call_operand.hbm [shape: f32[18], index: 1, kind: input, shape index: {}]   ;;  %s337_s2 = inlined_call_operand.vmem [shape: f32[6], index: 2, kind: input, shape index: {}]   ;;  %s338_s3 = inlined_call_operand.hbm [shape: f32[2,3,8,128], index: 3, kind: output, shape index: {}]  }
   0x1   :  { %9 = vsyncpa [#allocation5], 0 }
   0x2   :  { %10 = vsyncpa [#allocation6], 0 }
   0x3   :  { %11 = vsyncpa [#allocation4], 0  ;;  %s16_s14 = sshll.u32 %s335_s0, 4  ;;  %s291_s15 = smov [#allocation2]   ;;  %s17_s14 = int_to_ptr.hbm [resolvable:$true] %s16_s14 }
   0x4   :  { %s18_s16 = sshll.u32 %s291_s15, 4  ;;  %s30_s19 = sshll.u32 %s336_s1, 4  ;;  %s19_s16 = int_to_ptr.vmem [resolvable:$true] %s18_s16  ;;  %s31_s19 = int_to_ptr.hbm [resolvable:$true] %s30_s19 }
   0x5   :  { %s292_s20 = smov 128   ;;  %s293_s21 = smov 8  }
   0x6   :  { %24 = dma.hbm_to_vmem [thread:$0]  %s17_s14, 768, %s19_s16, [#allocation3], %s292_s20, %s292_s20, %s293_s21  }
   0x7   :  { %s294_s22 = smov [#allocation7]   ;;  %s39_s0 = sshll.u32 %s337_s2, 4  ;;  %s40_s0 = int_to_ptr.vmem [resolvable:$true] %s39_s0 }
   0x8   :  { %33 = dma.hbm_to_smem %s31_s19, 16, %s294_s22, [#allocation5]  }
   0x9   :  { %s295_s25 = smov [#allocation8]  }
   0xa   :  { %42 = dma.vmem_to_smem %s40_s0, 16, %s295_s25, [#allocation6]  }
   0xb   :  { %283 = dma.done.wait [#allocation3], 768  }
   0xc   :  { %284 = vsyncadd [#allocation3], 4294966528 }
   0xd   :  { %285 = dma.done.wait [#allocation5], 16  }
   0xe   :  { %286 = vsyncadd [#allocation5], 4294967280 }
   0xf   :  { %287 = dma.done.wait [#allocation6], 16  }
  0x10   :  { %288 = vsyncadd [#allocation6], 4294967280 }
  0x11   :  { %55 = sfence }
  0x12   :  { %s57_s1 = sld [smem:[#allocation8]]  ;;  %v56_v0 = vld [vmem:[#allocation2] sm:$0xff]  ;;  %v61_v1 = vld [vmem:[#allocation2 + $0x8] sm:$0xff]  ;;  %v66_v3 = vld [vmem:[#allocation2 + $0x10] sm:$0xff]  ;;  %s296_s23 = smov [#allocation9]  }
  0x13   :  { %s183_s26 = sld [smem:[#allocation8 + $0x1]]  ;;  %v109_v27 = vld [vmem:[#allocation2 + $0x18] sm:$0xff]  ;;  %v114_v30 = vld [vmem:[#allocation2 + $0x20] sm:$0xff]  ;;  %v119_v34 = vld [vmem:[#allocation2 + $0x28] sm:$0xff]  ;;  %s166_s24 = sshll.u32 %s296_s23, 4  ;;  %s167_s24 = int_to_ptr.vmem [resolvable:$true] %s166_s24 }
  0x14   :  { %s184_s27 = sld [smem:[#allocation8 + $0x2]] }
  0x15   :  { %s70_s28 = sld [smem:[#allocation7]] }
  0x16   :  { %s185_s29 = sld [smem:[#allocation7 + $0x1]] }
  0x17   :  { %s186_s30 = sld [smem:[#allocation7 + $0x2]] }
  0x18   :  { %v58_v2 = vstv %s57_s1  ;;  %s187_s2 = sld [smem:[#allocation7 + $0x3]]  ;;  %s168_s1 = sshll.u32 %s338_s3, 4  ;;  %s169_s1 = int_to_ptr.hbm [resolvable:$true] %s168_s1 }
  0x19   :  { %v59_v4 = vsub.f32 %v56_v0, %v58_v2  ;;  %v63_v5 = vstv %s183_s26  ;;  %s188_s4 = sld [smem:[#allocation7 + $0x4]] }
  0x1a   :  { %v64_v6 = vsub.f32 %v61_v1, %v63_v5  ;;  %v68_v7 = vstv %s184_s27  ;;  %s189_s5 = sld [smem:[#allocation7 + $0x5]] }
  0x1b   :  { %v69_v8 = vsub.f32 %v66_v3, %v68_v7  ;;  %v71_v9 = vstv %s70_s28  ;;  %s190_s6 = sld [smem:[#allocation7 + $0x6]] }
  0x1c   :  { %v72_v10 = vmul.f32 %v71_v9, %v59_v4  ;;  %v74_v11 = vstv %s185_s29  ;;  %s191_s7 = sld [smem:[#allocation7 + $0x7]] }
  0x1d   :  { %v75_v12 = vmul.f32 %v74_v11, %v64_v6  ;;  %v78_v13 = vstv %s186_s30  ;;  %s192_s8 = sld [smem:[#allocation7 + $0x8]] }
  0x1e   :  { %v79_v14 = vmul.f32 %v78_v13, %v69_v8  ;;  %v83_v15 = vstv %s187_s2  ;;  %s193_s9 = sld [smem:[#allocation8 + $0x3]] }
  0x1f   :  { %v76_v16 = vadd.f32 %v75_v12, %v72_v10  ;;  %v84_v17 = vmul.f32 %v83_v15, %v59_v4  ;;  %v86_v18 = vstv %s188_s4  ;;  %s194_s10 = sld [smem:[#allocation8 + $0x4]] }
  0x20   :  { %v87_v19 = vmul.f32 %v86_v18, %v64_v6  ;;  %v90_v20 = vstv %s189_s5  ;;  %s195_s11 = sld [smem:[#allocation8 + $0x5]] }
  0x21   :  { %v80_v21 = vadd.f32 %v79_v14, %v76_v16  ;;  %v91_v22 = vmul.f32 %v90_v20, %v69_v8  ;;  %v96_v23 = vstv %s190_s6  ;;  %s196_s12 = sld [smem:[#allocation7 + $0x9]] }
  0x22   :  { %v88_v24 = vadd.f32 %v87_v19, %v84_v17  ;;  %v97_v25 = vmul.f32 %v96_v23, %v59_v4  ;;  %v99_v26 = vstv %s191_s7  ;;  %s197_s13 = sld [smem:[#allocation7 + $0xa]] }
  0x23   :  { %81 = vst [vmem:[#allocation9] sm:$0xff] %v80_v21  ;;  %v100_v28 = vmul.f32 %v99_v26, %v64_v6  ;;  %v103_v29 = vstv %s192_s8  ;;  %s198_s14 = sld [smem:[#allocation7 + $0xb]] }
  0x24   :  { %v92_v31 = vadd.f32 %v91_v22, %v88_v24  ;;  %v104_v32 = vmul.f32 %v103_v29, %v69_v8  ;;  %v111_v33 = vstv %s193_s9  ;;  %s199_s15 = sld [smem:[#allocation7 + $0xc]] }
  0x25   :  { %v101_v35 = vadd.f32 %v100_v28, %v97_v25  ;;  %v112_v36 = vsub.f32 %v109_v27, %v111_v33  ;;  %v116_v37 = vstv %s194_s10  ;;  %s200_s16 = sld [smem:[#allocation7 + $0xd]] }
  0x26   :  { %94 = vst [vmem:[#allocation9 + $0x8] sm:$0xff] %v92_v31  ;;  %v117_v38 = vsub.f32 %v114_v30, %v116_v37  ;;  %v121_v39 = vstv %s195_s11  ;;  %s201_s17 = sld [smem:[#allocation7 + $0xe]] }
  0x27   :  { %v105_v40 = vadd.f32 %v104_v32, %v101_v35  ;;  %v122_v41 = vsub.f32 %v119_v34, %v121_v39  ;;  %v124_v42 = vstv %s196_s12  ;;  %s202_s18 = sld [smem:[#allocation7 + $0xf]] }
  0x28   :  { %v125_v43 = vmul.f32 %v124_v42, %v112_v36  ;;  %v127_v44 = vstv %s197_s13  ;;  %s203_s19 = sld [smem:[#allocation7 + $0x10]] }
  0x29   :  { %107 = vst [vmem:[#allocation9 + $0x10] sm:$0xff] %v105_v40  ;;  %v128_v45 = vmul.f32 %v127_v44, %v117_v38  ;;  %v131_v46 = vstv %s198_s14  ;;  %s204_s22 = sld [smem:[#allocation7 + $0x11]] }
  0x2a   :  { %v132_v47 = vmul.f32 %v131_v46, %v122_v41  ;;  %v137_v48 = vstv %s199_s15 }
  0x2b   :  { %v129_v49 = vadd.f32 %v128_v45, %v125_v43  ;;  %v138_v50 = vmul.f32 %v137_v48, %v112_v36  ;;  %v140_v51 = vstv %s200_s16 }
  0x2c   :  { %v141_v52 = vmul.f32 %v140_v51, %v117_v38  ;;  %v144_v53 = vstv %s201_s17 }
  0x2d   :  { %v133_v54 = vadd.f32 %v132_v47, %v129_v49  ;;  %v145_v55 = vmul.f32 %v144_v53, %v122_v41  ;;  %v150_v56 = vstv %s202_s18 }
  0x2e   :  { %v142_v57 = vadd.f32 %v141_v52, %v138_v50  ;;  %v151_v58 = vmul.f32 %v150_v56, %v112_v36  ;;  %v153_v59 = vstv %s203_s19 }
  0x2f   :  { %135 = vst [vmem:[#allocation9 + $0x18] sm:$0xff] %v133_v54  ;;  %v154_v60 = vmul.f32 %v153_v59, %v117_v38  ;;  %v157_v61 = vstv %s204_s22 }
  0x30   :  { %v146_v62 = vadd.f32 %v145_v55, %v142_v57  ;;  %v158_v63 = vmul.f32 %v157_v61, %v122_v41 }
  0x31   :  { %v155_v0 = vadd.f32 %v154_v60, %v151_v58 }
  0x32   :  { %148 = vst [vmem:[#allocation9 + $0x20] sm:$0xff] %v146_v62 }
  0x33   :  { %v159_v1 = vadd.f32 %v158_v63, %v155_v0 }
  0x35   :  { %161 = vst [vmem:[#allocation9 + $0x28] sm:$0xff] %v159_v1 }
  0x36   :  { %174 = dma.vmem_to_hbm [thread:$0]  %s167_s24, 768, %s169_s1, [#allocation4], %s292_s20, %s292_s20, %s293_s21  }
  0x37   :  { %289 = dma.done.wait [#allocation4], 768  }
  0x38   :  { %290 = vsyncadd [#allocation4], 4294966528 }
  0x39   :  { %179 = vsyncpa [#allocation3], 1 }
  0x3a   :  { %180 = vsyncpa [#allocation4], 1 }
  0x3b   :  { %181 = vsyncpa [#allocation5], 1 }
  0x3c   :  { %182 = vsyncpa [#allocation6], 1 }

</bundles_post_ra>
